<compile_context>
chip_gen: v6e
topology: v6e:2x2x1
jax: 0.10.0
libtpu: 0.0.40
codegen_flags: <defaults>
</compile_context>

<pallas_src>
import jax
import jax.numpy as jnp
from jax.experimental import pallas as pl
from jax.experimental.pallas import tpu as pltpu


def _basic_kernel(x_ref, t1_ref, b1_ref, alpha_ref, t2_ref, b2_ref,
                  o_ref, mid_ref):
    """One batch element per grid step (lane-dense folded layout).

    x_ref    : (1, H+2, W*Cin)       input, zero-padded in H only
    t1_ref   : (3, W*Cin, W*Cmid)    conv1 Toeplitz weights (per ky)
    b1_ref   : (1, W*Cmid)           conv1 bias tiled over W
    alpha_ref: (1,)  in SMEM         PReLU parameter (scalar)
    t2_ref   : (3, W*Cmid, W*Cout)   conv2 Toeplitz weights (per ky)
    b2_ref   : (1, W*Cout)           conv2 bias tiled over W
    o_ref    : (1, H, W*Cout)
    mid_ref  : (H+2, W*Cmid)         VMEM scratch (H-halo for conv2)
    """
    H = o_ref.shape[1]
    WCmid = mid_ref.shape[1]
    WCout = o_ref.shape[2]

    # ---- conv1: 3x3 pad=1 as 3 lane-dense matmuls (K=W*Cin, N=W*Cmid) ----
    acc1 = jnp.dot(x_ref[0, 0:H, :], t1_ref[0],
                   preferred_element_type=jnp.float32)
    acc1 = acc1 + jnp.dot(x_ref[0, 1:H + 1, :], t1_ref[1],
                          preferred_element_type=jnp.float32)
    acc1 = acc1 + jnp.dot(x_ref[0, 2:H + 2, :], t1_ref[2],
                          preferred_element_type=jnp.float32)
    acc1 = acc1 + b1_ref[...]                      # (H, W*Cmid) + (1, W*Cmid)

    # ---- PReLU (single shared parameter, scalar from SMEM) ----
    a = alpha_ref[0]
    act1 = jnp.where(acc1 >= 0.0, acc1, acc1 * a)

    # ---- stage intermediate with a 1-row zero halo (H padding only; the
    #      W padding is already folded into the Toeplitz weights) ----
    zrow = jnp.zeros((1, WCmid), jnp.float32)
    mid_ref[0:1, :] = zrow
    mid_ref[H + 1:H + 2, :] = zrow
    mid_ref[1:H + 1, :] = act1

    # ---- conv2: 3x3 pad=1 as 3 lane-dense matmuls (K=W*Cmid, N=W*Cout) ----
    acc2 = jnp.dot(mid_ref[0:H, :], t2_ref[0],
                   preferred_element_type=jnp.float32)
    acc2 = acc2 + jnp.dot(mid_ref[1:H + 1, :], t2_ref[1],
                          preferred_element_type=jnp.float32)
    acc2 = acc2 + jnp.dot(mid_ref[2:H + 2, :], t2_ref[2],
                          preferred_element_type=jnp.float32)
    acc2 = acc2 + b2_ref[...]

    # ---- identity skip (Cin == Cout): interior rows of the H-padded input ----
    o_ref[...] = (acc2 + x_ref[0, 1:H + 1, :]).reshape(1, H, WCout)


def _conv_to_toeplitz(w, W):
    """HWIO (3,3,Cin,Cout) -> (3, W*Cin, W*Cout) with the W-dim SAME padding
    folded in:  T[ky, wi*Cin+ci, wo*Cout+co] = w[ky, kx, ci, co] where
    wi == wo + kx - 1 (contributions outside [0, W) are dropped == zero pad).
    """
    K = w.shape[0]
    Cin, Cout = w.shape[2], w.shape[3]
    eyes = jnp.stack([jnp.eye(W, k=1 - kx, dtype=w.dtype) for kx in range(K)])
    t = jnp.einsum('kab,ykcd->yacbd', eyes, w)      # (3, W, Cin, W, Cout)
    return t.reshape(K, W * Cin, W * Cout)


@jax.jit
def basic_forward(x_nchw, w1, b1, alpha, w2, b2):
    """x_nchw: (B, Cin, H, W) float32.  Returns (B, Cout, H, W)."""
    B, Cin, H, W = x_nchw.shape
    Cmid = w1.shape[3]
    Cout = w2.shape[3]
    assert Cout == Cin  # identity skip of this instantiation

    # NCHW -> lane-dense (B, H, W*Cin); zero-pad H by 1 on each side.
    x = jnp.transpose(x_nchw, (0, 2, 3, 1)).reshape(B, H, W * Cin)
    xpadh = jnp.pad(x, ((0, 0), (1, 1), (0, 0)))

    t1 = _conv_to_toeplitz(w1, W)                       # (3, W*Cin, W*Cmid)
    t2 = _conv_to_toeplitz(w2, W)                       # (3, W*Cmid, W*Cout)
    b1row = jnp.tile(b1.reshape(1, Cmid), (1, W))       # (1, W*Cmid)
    b2row = jnp.tile(b2.reshape(1, Cout), (1, W))       # (1, W*Cout)
    alpha_s = alpha.reshape(1).astype(jnp.float32)      # SMEM scalar

    out = pl.pallas_call(
        _basic_kernel,
        out_shape=jax.ShapeDtypeStruct((B, H, W * Cout), jnp.float32),
        grid_spec=pltpu.PrefetchScalarGridSpec(
            num_scalar_prefetch=0,
            grid=(B,),
            in_specs=[
                pl.BlockSpec((1, H + 2, W * Cin), lambda b: (b, 0, 0)),
                pl.BlockSpec((3, W * Cin, W * Cmid), lambda b: (0, 0, 0)),
                pl.BlockSpec((1, W * Cmid), lambda b: (0, 0)),
                pl.BlockSpec(memory_space=pltpu.MemorySpace.SMEM),
                pl.BlockSpec((3, W * Cmid, W * Cout), lambda b: (0, 0, 0)),
                pl.BlockSpec((1, W * Cout), lambda b: (0, 0)),
            ],
            out_specs=pl.BlockSpec((1, H, W * Cout), lambda b: (b, 0, 0)),
            scratch_shapes=[pltpu.VMEM((H + 2, W * Cmid), jnp.float32)],
        ),
        compiler_params=pltpu.CompilerParams(
            dimension_semantics=("parallel",)),
    )(xpadh, t1, b1row, alpha_s, t2, b2row)

    # (B, H, W*Cout) -> (B, Cout, H, W)
    return jnp.transpose(out.reshape(B, H, W, Cout), (0, 3, 1, 2))


def _reference(x_nchw, w1, b1, alpha, w2, b2):
    """Plain-JAX reference of the same forward pass (for verification)."""
    x = jnp.transpose(x_nchw, (0, 2, 3, 1))
    dn = jax.lax.conv_dimension_numbers(x.shape, w1.shape,
                                        ('NHWC', 'HWIO', 'NHWC'))
    y = jax.lax.conv_general_dilated(x, w1, (1, 1), 'SAME',
                                     dimension_numbers=dn)
    y = y + b1.reshape(1, 1, 1, -1)
    y = jnp.where(y >= 0.0, y, y * alpha.reshape(()))
    dn2 = jax.lax.conv_dimension_numbers(y.shape, w2.shape,
                                         ('NHWC', 'HWIO', 'NHWC'))
    z = jax.lax.conv_general_dilated(y, w2, (1, 1), 'SAME',
                                     dimension_numbers=dn2)
    z = z + b2.reshape(1, 1, 1, -1)
    z = z + x
    return jnp.transpose(z, (0, 3, 1, 2))


if __name__ == "__main__":
    key = jax.random.PRNGKey(0)
    B, Cin, H, W = 2, 4, 16, 16
    Cmid = 8                       # intChans = [4, 8, 4]

    k1, k2, k3, k4, k5 = jax.random.split(key, 5)
    x = jax.random.normal(k1, (B, Cin, H, W), jnp.float32)
    # deterministic synthetic parameters (HWIO weight layout)
    w1 = jax.random.normal(k2, (3, 3, Cin, Cmid), jnp.float32) * 0.1
    b1 = jax.random.normal(k3, (Cmid,), jnp.float32) * 0.1
    w2 = jax.random.normal(k4, (3, 3, Cmid, Cin), jnp.float32) * 0.1
    b2 = jax.random.normal(k5, (Cin,), jnp.float32) * 0.1
    alpha = jnp.full((1,), 0.25, jnp.float32)   # PReLU init=0.25

    out = basic_forward(x, w1, b1, alpha, w2, b2)
    out = jax.block_until_ready(out)

    ref = _reference(x, w1, b1, alpha, w2, b2)
    assert out.shape == (B, Cin, H, W)
    if not bool(jnp.allclose(out, ref, atol=1e-4, rtol=1e-4)):
        raise AssertionError("Pallas kernel output mismatch vs JAX reference")

    print("KERNEL_OK")
</pallas_src>

<mosaic_0001>
module attributes {stable_mosaic.version = 11 : i64} {
  func.func @_basic_kernel(%arg0: i32, %arg1: memref<1x18x64xf32, #tpu.memory_space<vmem>>, %arg2: memref<3x64x128xf32, #tpu.memory_space<vmem>>, %arg3: memref<1x128xf32, #tpu.memory_space<vmem>>, %arg4: memref<1xf32, #tpu.memory_space<smem>>, %arg5: memref<3x128x64xf32, #tpu.memory_space<vmem>>, %arg6: memref<1x64xf32, #tpu.memory_space<vmem>>, %arg7: memref<1x16x64xf32, #tpu.memory_space<vmem>>, %arg8: memref<18x128xf32, #tpu.memory_space<vmem>>) attributes {dimension_semantics = [#tpu.dimension_semantics<parallel>], iteration_bounds = array<i64: 2>, scalar_prefetch = 0 : i64, scratch_operands = 1 : i64, tpu.core_type = #tpu.core_type<tc>, window_params = [{transform_indices = @transform_0, window_bounds = array<i64: 1, 18, 64>}, {pipeline_mode = #tpu.pipeline_mode<synchronous>, transform_indices = @transform_1, window_bounds = array<i64: 3, 64, 128>}, {pipeline_mode = #tpu.pipeline_mode<synchronous>, transform_indices = @transform_2, window_bounds = array<i64: 1, 128>}, {transform_indices = @transform_3, window_bounds = array<i64: 1>}, {pipeline_mode = #tpu.pipeline_mode<synchronous>, transform_indices = @transform_4, window_bounds = array<i64: 3, 128, 64>}, {pipeline_mode = #tpu.pipeline_mode<synchronous>, transform_indices = @transform_5, window_bounds = array<i64: 1, 64>}, {transform_indices = @transform_6, window_bounds = array<i64: 1, 16, 64>}]} {
    %c0 = arith.constant 0 : index
    %c0_0 = arith.constant 0 : index
    %c0_1 = arith.constant 0 : index
    %0 = vector.load %arg1[%c0, %c0_0, %c0_1] : memref<1x18x64xf32, #tpu.memory_space<vmem>>, vector<1x16x64xf32>
    %1 = vector.shape_cast %0 : vector<1x16x64xf32> to vector<16x64xf32>
    %c0_2 = arith.constant 0 : index
    %c0_3 = arith.constant 0 : index
    %c0_4 = arith.constant 0 : index
    %2 = vector.load %arg2[%c0_2, %c0_3, %c0_4] : memref<3x64x128xf32, #tpu.memory_space<vmem>>, vector<1x64x128xf32>
    %3 = vector.shape_cast %2 : vector<1x64x128xf32> to vector<64x128xf32>
    %cst = arith.constant dense<0.000000e+00> : vector<16x128xf32>
    %4 = tpu.matmul %1, %3, %cst {dimension_numbers = #tpu.dot_dimension_numbers<[1], [0], [0], [1], [0, 0, 1, 1], [], []>} : vector<16x64xf32>, vector<64x128xf32>, vector<16x128xf32> -> vector<16x128xf32>
    %c0_5 = arith.constant 0 : index
    %c1 = arith.constant 1 : index
    %c0_6 = arith.constant 0 : index
    %5 = vector.load %arg1[%c0_5, %c1, %c0_6] : memref<1x18x64xf32, #tpu.memory_space<vmem>>, vector<1x16x64xf32>
    %6 = vector.shape_cast %5 : vector<1x16x64xf32> to vector<16x64xf32>
    %c1_7 = arith.constant 1 : index
    %c0_8 = arith.constant 0 : index
    %c0_9 = arith.constant 0 : index
    %7 = vector.load %arg2[%c1_7, %c0_8, %c0_9] : memref<3x64x128xf32, #tpu.memory_space<vmem>>, vector<1x64x128xf32>
    %8 = vector.shape_cast %7 : vector<1x64x128xf32> to vector<64x128xf32>
    %cst_10 = arith.constant dense<0.000000e+00> : vector<16x128xf32>
    %9 = tpu.matmul %6, %8, %cst_10 {dimension_numbers = #tpu.dot_dimension_numbers<[1], [0], [0], [1], [0, 0, 1, 1], [], []>} : vector<16x64xf32>, vector<64x128xf32>, vector<16x128xf32> -> vector<16x128xf32>
    %10 = arith.addf %4, %9 : vector<16x128xf32>
    %c0_11 = arith.constant 0 : index
    %c2 = arith.constant 2 : index
    %c0_12 = arith.constant 0 : index
    %11 = vector.load %arg1[%c0_11, %c2, %c0_12] : memref<1x18x64xf32, #tpu.memory_space<vmem>>, vector<1x16x64xf32>
    %12 = vector.shape_cast %11 : vector<1x16x64xf32> to vector<16x64xf32>
    %c2_13 = arith.constant 2 : index
    %c0_14 = arith.constant 0 : index
    %c0_15 = arith.constant 0 : index
    %13 = vector.load %arg2[%c2_13, %c0_14, %c0_15] : memref<3x64x128xf32, #tpu.memory_space<vmem>>, vector<1x64x128xf32>
    %14 = vector.shape_cast %13 : vector<1x64x128xf32> to vector<64x128xf32>
    %cst_16 = arith.constant dense<0.000000e+00> : vector<16x128xf32>
    %15 = tpu.matmul %12, %14, %cst_16 {dimension_numbers = #tpu.dot_dimension_numbers<[1], [0], [0], [1], [0, 0, 1, 1], [], []>} : vector<16x64xf32>, vector<64x128xf32>, vector<16x128xf32> -> vector<16x128xf32>
    %16 = arith.addf %10, %15 : vector<16x128xf32>
    %c0_17 = arith.constant 0 : index
    %c0_18 = arith.constant 0 : index
    %17 = vector.load %arg3[%c0_17, %c0_18] : memref<1x128xf32, #tpu.memory_space<vmem>>, vector<1x128xf32>
    %18 = vector.broadcast %17 : vector<1x128xf32> to vector<16x128xf32>
    %19 = arith.addf %16, %18 : vector<16x128xf32>
    %c0_19 = arith.constant 0 : index
    %20 = memref.load %arg4[%c0_19] : memref<1xf32, #tpu.memory_space<smem>>
    %cst_20 = arith.constant 0.000000e+00 : f32
    %21 = vector.broadcast %cst_20 : f32 to vector<16x128xf32>
    %22 = arith.cmpf oge, %19, %21 : vector<16x128xf32>
    %23 = vector.broadcast %20 : f32 to vector<16x128xf32>
    %24 = arith.mulf %19, %23 : vector<16x128xf32>
    %25 = arith.select %22, %19, %24 : vector<16x128xi1>, vector<16x128xf32>
    %cst_21 = arith.constant 0.000000e+00 : f32
    %26 = vector.broadcast %cst_21 : f32 to vector<1x128xf32>
    %c0_22 = arith.constant 0 : index
    %c0_23 = arith.constant 0 : index
    %27 = vector.load %arg8[%c0_22, %c0_23] : memref<18x128xf32, #tpu.memory_space<vmem>>, vector<1x128xf32>
    tpu.vector_store %arg8[%c0_22, %c0_23], %26 {strides = array<i32>} : memref<18x128xf32, #tpu.memory_space<vmem>>, vector<1x128xf32>,
    %c17 = arith.constant 17 : index
    %c0_24 = arith.constant 0 : index
    %28 = vector.load %arg8[%c17, %c0_24] : memref<18x128xf32, #tpu.memory_space<vmem>>, vector<1x128xf32>
    tpu.vector_store %arg8[%c17, %c0_24], %26 {strides = array<i32>} : memref<18x128xf32, #tpu.memory_space<vmem>>, vector<1x128xf32>,
    %c1_25 = arith.constant 1 : index
    %c0_26 = arith.constant 0 : index
    %29 = vector.load %arg8[%c1_25, %c0_26] : memref<18x128xf32, #tpu.memory_space<vmem>>, vector<16x128xf32>
    tpu.vector_store %arg8[%c1_25, %c0_26], %25 {strides = array<i32>} : memref<18x128xf32, #tpu.memory_space<vmem>>, vector<16x128xf32>,
    %c0_27 = arith.constant 0 : index
    %c0_28 = arith.constant 0 : index
    %30 = vector.load %arg8[%c0_27, %c0_28] : memref<18x128xf32, #tpu.memory_space<vmem>>, vector<16x128xf32>
    %c0_29 = arith.constant 0 : index
    %c0_30 = arith.constant 0 : index
    %c0_31 = arith.constant 0 : index
    %31 = vector.load %arg5[%c0_29, %c0_30, %c0_31] : memref<3x128x64xf32, #tpu.memory_space<vmem>>, vector<1x128x64xf32>
    %32 = vector.shape_cast %31 : vector<1x128x64xf32> to vector<128x64xf32>
    %cst_32 = arith.constant dense<0.000000e+00> : vector<16x64xf32>
    %33 = tpu.matmul %30, %32, %cst_32 {dimension_numbers = #tpu.dot_dimension_numbers<[1], [0], [0], [1], [0, 0, 1, 1], [], []>} : vector<16x128xf32>, vector<128x64xf32>, vector<16x64xf32> -> vector<16x64xf32>
    %c1_33 = arith.constant 1 : index
    %c0_34 = arith.constant 0 : index
    %34 = vector.load %arg8[%c1_33, %c0_34] : memref<18x128xf32, #tpu.memory_space<vmem>>, vector<16x128xf32>
    %c1_35 = arith.constant 1 : index
    %c0_36 = arith.constant 0 : index
    %c0_37 = arith.constant 0 : index
    %35 = vector.load %arg5[%c1_35, %c0_36, %c0_37] : memref<3x128x64xf32, #tpu.memory_space<vmem>>, vector<1x128x64xf32>
    %36 = vector.shape_cast %35 : vector<1x128x64xf32> to vector<128x64xf32>
    %cst_38 = arith.constant dense<0.000000e+00> : vector<16x64xf32>
    %37 = tpu.matmul %34, %36, %cst_38 {dimension_numbers = #tpu.dot_dimension_numbers<[1], [0], [0], [1], [0, 0, 1, 1], [], []>} : vector<16x128xf32>, vector<128x64xf32>, vector<16x64xf32> -> vector<16x64xf32>
    %38 = arith.addf %33, %37 : vector<16x64xf32>
    %c2_39 = arith.constant 2 : index
    %c0_40 = arith.constant 0 : index
    %39 = vector.load %arg8[%c2_39, %c0_40] : memref<18x128xf32, #tpu.memory_space<vmem>>, vector<16x128xf32>
    %c2_41 = arith.constant 2 : index
    %c0_42 = arith.constant 0 : index
    %c0_43 = arith.constant 0 : index
    %40 = vector.load %arg5[%c2_41, %c0_42, %c0_43] : memref<3x128x64xf32, #tpu.memory_space<vmem>>, vector<1x128x64xf32>
    %41 = vector.shape_cast %40 : vector<1x128x64xf32> to vector<128x64xf32>
    %cst_44 = arith.constant dense<0.000000e+00> : vector<16x64xf32>
    %42 = tpu.matmul %39, %41, %cst_44 {dimension_numbers = #tpu.dot_dimension_numbers<[1], [0], [0], [1], [0, 0, 1, 1], [], []>} : vector<16x128xf32>, vector<128x64xf32>, vector<16x64xf32> -> vector<16x64xf32>
    %43 = arith.addf %38, %42 : vector<16x64xf32>
    %c0_45 = arith.constant 0 : index
    %c0_46 = arith.constant 0 : index
    %44 = vector.load %arg6[%c0_45, %c0_46] : memref<1x64xf32, #tpu.memory_space<vmem>>, vector<1x64xf32>
    %45 = vector.broadcast %44 : vector<1x64xf32> to vector<16x64xf32>
    %46 = arith.addf %43, %45 : vector<16x64xf32>
    %c0_47 = arith.constant 0 : index
    %c1_48 = arith.constant 1 : index
    %c0_49 = arith.constant 0 : index
    %47 = vector.load %arg1[%c0_47, %c1_48, %c0_49] : memref<1x18x64xf32, #tpu.memory_space<vmem>>, vector<1x16x64xf32>
    %48 = vector.shape_cast %47 : vector<1x16x64xf32> to vector<16x64xf32>
    %49 = arith.addf %46, %48 : vector<16x64xf32>
    %50 = vector.shape_cast %49 : vector<16x64xf32> to vector<1x16x64xf32>
    %c0_50 = arith.constant 0 : index
    %c0_51 = arith.constant 0 : index
    %c0_52 = arith.constant 0 : index
    %51 = vector.load %arg7[%c0_50, %c0_51, %c0_52] : memref<1x16x64xf32, #tpu.memory_space<vmem>>, vector<1x16x64xf32>
    tpu.vector_store %arg7[%c0_50, %c0_51, %c0_52], %50 {strides = array<i32>} : memref<1x16x64xf32, #tpu.memory_space<vmem>>, vector<1x16x64xf32>,
    return
  }
  func.func @transform_0(%arg0: i32) -> (i32, i32, i32) {
    %c0_i32 = arith.constant 0 : i32
    %c0_i32_0 = arith.constant 0 : i32
    %c0_i32_1 = arith.constant 0 : i32
    return %arg0, %c0_i32, %c0_i32_0 : i32, i32, i32
  }
  func.func @transform_1(%arg0: i32) -> (i32, i32, i32) {
    %c0_i32 = arith.constant 0 : i32
    %c0_i32_0 = arith.constant 0 : i32
    %c0_i32_1 = arith.constant 0 : i32
    %c0_i32_2 = arith.constant 0 : i32
    return %c0_i32, %c0_i32_0, %c0_i32_1 : i32, i32, i32
  }
  func.func @transform_2(%arg0: i32) -> (i32, i32) {
    %c0_i32 = arith.constant 0 : i32
    %c0_i32_0 = arith.constant 0 : i32
    %c0_i32_1 = arith.constant 0 : i32
    return %c0_i32, %c0_i32_0 : i32, i32
  }
  func.func @transform_3(%arg0: i32) -> i32 {
    %c0_i32 = arith.constant 0 : i32
    %c0_i32_0 = arith.constant 0 : i32
    return %c0_i32 : i32
  }
  func.func @transform_4(%arg0: i32) -> (i32, i32, i32) {
    %c0_i32 = arith.constant 0 : i32
    %c0_i32_0 = arith.constant 0 : i32
    %c0_i32_1 = arith.constant 0 : i32
    %c0_i32_2 = arith.constant 0 : i32
    return %c0_i32, %c0_i32_0, %c0_i32_1 : i32, i32, i32
  }
  func.func @transform_5(%arg0: i32) -> (i32, i32) {
    %c0_i32 = arith.constant 0 : i32
    %c0_i32_0 = arith.constant 0 : i32
    %c0_i32_1 = arith.constant 0 : i32
    return %c0_i32, %c0_i32_0 : i32, i32
  }
  func.func @transform_6(%arg0: i32) -> (i32, i32, i32) {
    %c0_i32 = arith.constant 0 : i32
    %c0_i32_0 = arith.constant 0 : i32
    %c0_i32_1 = arith.constant 0 : i32
    return %arg0, %c0_i32, %c0_i32_0 : i32, i32, i32
  }
}

</mosaic_0001>

<bundles_post_ra>
// kernel: basic_forward.1
= control target key start
LH: loop header
LB: loop body
LE: loop exit
PB: predicated region body
PF: predicated region fallthrough
CT: control target
= control target key end

     0   :  { %s1275_s23 = smov 0   ;;  %s1542_s0 = inlined_call_operand.vmem [shape: f32[2,18,64], index: 0, kind: input, shape index: {}]   ;;  %s1543_s1 = inlined_call_operand.vmem [shape: f32[3,64,128], index: 1, kind: input, shape index: {}]   ;;  %s1544_s2 = inlined_call_operand.vmem [shape: f32[1,128], index: 2, kind: input, shape index: {}]   ;;  %s1545_s3 = inlined_call_operand.<no memory space> [shape: f32[1], index: 3, kind: input, shape index: {}]   ;;  %s1546_s4 = inlined_call_operand.vmem [shape: f32[3,128,64], index: 4, kind: input, shape index: {}]   ;;  %s1547_s5 = inlined_call_operand.vmem [shape: f32[1,64], index: 5, kind: input, shape index: {}]   ;;  %s1548_s6 = inlined_call_operand.vmem [shape: f32[2,16,64], index: 6, kind: output, shape index: {}]  }
   0x1   :  { %11 = sst [smem:[#allocation3]] %s1545_s3 }
   0x2 LB: > { %s905_s24 = sadd.s32 4294967295, %s1234_s23   ;;  %p909_p0 = scmp.ge.s32.totalorder %s1234_s23, 1  ;;  %s1234_s23 = sphi %s1275_s23, %s17_s23  }
   0x3   : > { %p213_p1 = scmp.lt.s32.totalorder %s1234_s23, 3 }
   0x5   : > { %p214_p2 = pnand %p909_p0, %p213_p1 }
   0x6   : > { %p243_p3 = scmp.lt.s32.totalorder (!%p214_p2), %s905_s24, 1  ;;  %s540_s27 = sld [smem:[#allocation3]] (!%p214_p2) }
   0x7   : > { %217 = sbr.rel (%p214_p2) target bundleno = 485 (0x1e5), region = 44 }
   0xc   : > { %v920_v0 = vld [vmem:[%s1543_s1 + $0x78] sm:$0xff]  ;;  %v919_v2 = vld [vmem:[%s1543_s1 + $0x70] sm:$0xff]  ;;  %v918_v4 = vld [vmem:[%s1543_s1 + $0x68] sm:$0xff]  ;;  %s1550_s24 = smov (!%p243_p3, %s905_s24), 1  ;;  %vm274_vm0 = vcmask 523264   ;;  %v1236_v58 = vmov 0.0  }
   0xd   : > { %v262_v1 = vld [vmem:[%s1543_s1 + $0x38] sm:$0xff]  ;;  %1056 = vmatprep.subr.mxu0 %v920_v0  ;;  %v261_v3 = vld [vmem:[%s1543_s1 + $0x30] sm:$0xff]  ;;  %v260_v5 = vld [vmem:[%s1543_s1 + $0x28] sm:$0xff]  ;;  %s1218_s20 = smul.u32 24, %s1550_s24  ;;  %548 = vst [vmem:[#allocation2] sm:$0x1] %v1236_v58 }
   0xe   : > { %1075 = vmatprep.subr.mxu1 %v262_v1  ;;  %1057 = vmatpush3.msra.mxu0 %v920_v0  ;;  %v917_v6 = vld [vmem:[%s1543_s1 + $0x60] sm:$0xff]  ;;  %v916_v8 = vld [vmem:[%s1543_s1 + $0x58] sm:$0xff]  ;;  %v915_v10 = vld [vmem:[%s1543_s1 + $0x50] sm:$0xff]  ;;  %549 = vst [vmem:[#allocation2 + $0x11] sm:$0x1] %v1236_v58  ;;  %s971_s15 = sshll.u32 %s1550_s24, 4 }
   0xf   : > { %1076 = vmatpush3.msra.mxu1 %v262_v1  ;;  %1058 = vmatprep.subr.mxu0 %v919_v2  ;;  %v259_v7 = vld [vmem:[%s1543_s1 + $0x20] sm:$0xff]  ;;  %v258_v9 = vld [vmem:[%s1543_s1 + $0x18] sm:$0xff]  ;;  %v257_v11 = vld [vmem:[%s1543_s1 + $0x10] sm:$0xff]  ;;  %s1331_s8 = scalar_lea.vmem %s1542_s0, %s1218_s20  ;;  %s252_s18 = scalar_lea.vmem %s1548_s6, %s971_s15 }
  0x10   : > { %1077 = vmatprep.subr.mxu1 %v261_v3  ;;  %1059 = vmatpush3.msra.mxu0 %v919_v2  ;;  %v914_v12 = vld [vmem:[%s1543_s1 + $0x48] sm:$0xff]  ;;  %v913_v14 = vld [vmem:[%s1543_s1 + $0x40] sm:$0xff]  ;;  %v932_v20 = vld [vmem:[%s1543_s1 + $0xb8] sm:$0xff] }
  0x11   : > { %1078 = vmatpush3.msra.mxu1 %v261_v3  ;;  %1060 = vmatprep.subr.mxu0 %v918_v4  ;;  %v256_v13 = vld [vmem:[%s1543_s1 + $0x8] sm:$0xff]  ;;  %v255_v15 = vld [vmem:[%s1543_s1] sm:$0xff]  ;;  %v931_v22 = vld [vmem:[%s1543_s1 + $0xb0] sm:$0xff] }
  0x12   : > { %1079 = vmatprep.subr.mxu1 %v260_v5  ;;  %1061 = vmatpush3.msra.mxu0 %v918_v4  ;;  %v1340_v16 = vld [vmem:[%s1331_s8 + $0x1] sm:$0xff]  ;;  %v1344_v18 = vld [vmem:[%s1331_s8 + $0x9] sm:$0xff]  ;;  %v928_v25 = vld [vmem:[%s1543_s1 + $0x98] sm:$0xff] }
  0x13   : > { %1080 = vmatpush3.msra.mxu1 %v260_v5  ;;  %1062 = vmatprep.subr.mxu0 %v917_v6  ;;  %v253_v17 = vld [vmem:[%s1331_s8] sm:$0xff]  ;;  %v254_v19 = vld [vmem:[%s1331_s8 + $0x8] sm:$0xff]  ;;  %v927_v26 = vld [vmem:[%s1543_s1 + $0x90] sm:$0xff] }
  0x14   : > { %1081 = vmatprep.subr.mxu1 %v259_v7  ;;  %1063 = vmatpush3.msra.mxu0 %v917_v6  ;;  %v437_v21 = vld [vmem:[%s1331_s8 + $0x2] sm:$0xff]  ;;  %v438_v29 = vld [vmem:[%s1331_s8 + $0xa] sm:$0xff]  ;;  %v951_v30 = vld [vmem:[%s1546_s4 + $0xf8] sm:$0xff] }
  0x15   : > { %1082 = vmatpush3.msra.mxu1 %v259_v7  ;;  %1064 = vmatprep.subr.mxu0 %v916_v8  ;;  %v930_v23 = vld [vmem:[%s1543_s1 + $0xa8] sm:$0xff]  ;;  %v929_v24 = vld [vmem:[%s1543_s1 + $0xa0] sm:$0xff]  ;;  %v950_v31 = vld [vmem:[%s1546_s4 + $0xf0] sm:$0xff] }
  0x16   : > { %1083 = vmatprep.subr.mxu1 %v258_v9  ;;  %1065 = vmatpush3.msra.mxu0 %v916_v8  ;;  %v926_v27 = vld [vmem:[%s1543_s1 + $0x88] sm:$0xff]  ;;  %v925_v28 = vld [vmem:[%s1543_s1 + $0x80] sm:$0xff]  ;;  %v947_v34 = vld [vmem:[%s1546_s4 + $0xd8] sm:$0xff] }
  0x17   : > { %1084 = vmatpush3.msra.mxu1 %v258_v9  ;;  %1066 = vmatprep.subr.mxu0 %v915_v10  ;;  %v949_v32 = vld [vmem:[%s1546_s4 + $0xe8] sm:$0xff]  ;;  %v948_v33 = vld [vmem:[%s1546_s4 + $0xe0] sm:$0xff]  ;;  %v569_v35 = vld [vmem:[%s1546_s4 + $0x78] sm:$0xff]  ;;  %v543_v9 = vstv %s540_s27 }
  0x18   : > { %1085 = vmatprep.subr.mxu1 %v257_v11  ;;  %1067 = vmatpush3.msra.mxu0 %v915_v10  ;;  %v568_v36 = vld [vmem:[%s1546_s4 + $0x70] sm:$0xff]  ;;  %v567_v38 = vld [vmem:[%s1546_s4 + $0x68] sm:$0xff]  ;;  %v566_v40 = vld [vmem:[%s1546_s4 + $0x60] sm:$0xff] }
  0x19   : > { %1086 = vmatpush3.msra.mxu1 %v257_v11  ;;  %1068 = vmatprep.subr.mxu0 %v914_v12  ;;  %v946_v37 = vld [vmem:[%s1546_s4 + $0xd0] sm:$0xff]  ;;  %v945_v39 = vld [vmem:[%s1546_s4 + $0xc8] sm:$0xff]  ;;  %v944_v41 = vld [vmem:[%s1546_s4 + $0xc0] sm:$0xff] }
  0x1a   : > { %1087 = vmatprep.subr.mxu1 %v256_v13  ;;  %1069 = vmatpush3.msra.mxu0 %v914_v12  ;;  %v565_v42 = vld [vmem:[%s1546_s4 + $0x58] sm:$0xff]  ;;  %v564_v44 = vld [vmem:[%s1546_s4 + $0x50] sm:$0xff]  ;;  %v563_v46 = vld [vmem:[%s1546_s4 + $0x48] sm:$0xff] }
  0x1b   : > { %1088 = vmatpush3.msra.mxu1 %v256_v13  ;;  %1070 = vmatprep.subr.mxu0 %v913_v14  ;;  %v943_v43 = vld [vmem:[%s1546_s4 + $0xb8] sm:$0xff]  ;;  %v942_v45 = vld [vmem:[%s1546_s4 + $0xb0] sm:$0xff]  ;;  %v941_v47 = vld [vmem:[%s1546_s4 + $0xa8] sm:$0xff] }
  0x1c   : > { %1089 = vmatprep.subr.mxu1 %v255_v15  ;;  %1071 = vmatpush3.msra.mxu0 %v913_v14  ;;  %v940_v48 = vld [vmem:[%s1546_s4 + $0xa0] sm:$0xff]  ;;  %v939_v50 = vld [vmem:[%s1546_s4 + $0x98] sm:$0xff]  ;;  %v938_v52 = vld [vmem:[%s1546_s4 + $0x90] sm:$0xff] }
  0x1d   : > { %1072 = vmatprep.mubr.msk.f32.mxu0 %vm274_vm0, %v1340_v16  ;;  %1090 = vmatpush3.msra.mxu1 %v255_v15  ;;  %v562_v49 = vld [vmem:[%s1546_s4 + $0x40] sm:$0xff]  ;;  %v561_v51 = vld [vmem:[%s1546_s4 + $0x38] sm:$0xff]  ;;  %v560_v53 = vld [vmem:[%s1546_s4 + $0x30] sm:$0xff] }
  0x1e   : > { %1091 = vmatprep.mubr.msk.f32.mxu1 %vm274_vm0, %v253_v17  ;;  %1073 = vmatmul.mubr.msk.f32.vlgmr.msra.gmra.mxu0 %vm274_vm0, %v1344_v18  ;;  %v937_v54 = vld [vmem:[%s1546_s4 + $0x88] sm:$0xff]  ;;  %v936_v56 = vld [vmem:[%s1546_s4 + $0x80] sm:$0xff]  ;;  %v967_v59 = vld [vmem:[%s1546_s4 + $0x178] sm:$0xff] }
  0x1f   : > { %1092 = vmatmul.mubr.msk.f32.vlgmr.msra.gmra.mxu1 %vm274_vm0, %v254_v19  ;;  %1094 = vmatprep.subr.mxu0 %v932_v20  ;;  %v559_v55 = vld [vmem:[%s1546_s4 + $0x28] sm:$0xff]  ;;  %v558_v57 = vld [vmem:[%s1546_s4 + $0x20] sm:$0xff]  ;;  %v557_v60 = vld [vmem:[%s1546_s4 + $0x18] sm:$0xff] }
  0x20   : > { %1110 = vmatprep.mubr.msk.f32.mxu0 %vm274_vm0, %v437_v21  ;;  %1095 = vmatpush3.msra.mxu0 %v932_v20  ;;  %v556_v61 = vld [vmem:[%s1546_s4 + $0x10] sm:$0xff]  ;;  %v555_v62 = vld [vmem:[%s1546_s4 + $0x8] sm:$0xff]  ;;  %v554_v63 = vld [vmem:[%s1546_s4] sm:$0xff] }
  0x21   : > { %1096 = vmatprep.subr.mxu0 %v931_v22  ;;  %1113 = vmatprep.subr.mxu1 %v951_v30  ;;  %v935_v6 = vld [vmem:[%s1544_s2] ss:$0 sm:$0xff]  ;;  %v966_v20 = vld [vmem:[%s1546_s4 + $0x170] sm:$0xff]  ;;  %v965_v21 = vld [vmem:[%s1546_s4 + $0x168] sm:$0xff] }
  0x22   : > { %1097 = vmatpush3.msra.mxu0 %v931_v22  ;;  %1114 = vmatpush3.msra.mxu1 %v951_v30  ;;  %v964_v22 = vld [vmem:[%s1546_s4 + $0x160] sm:$0xff]  ;;  %v959_v30 = vld [vmem:[%s1546_s4 + $0x138] sm:$0xff] }
  0x23   : > { %1098 = vmatprep.subr.mxu0 %v930_v23  ;;  %1115 = vmatprep.subr.mxu1 %v950_v31 }
  0x24   : > { %1099 = vmatpush3.msra.mxu0 %v930_v23  ;;  %1116 = vmatpush3.msra.mxu1 %v950_v31  ;;  %v963_v23 = vld [vmem:[%s1546_s4 + $0x158] sm:$0xff]  ;;  %v958_v31 = vld [vmem:[%s1546_s4 + $0x130] sm:$0xff] }
  0x25   : > { %1100 = vmatprep.subr.mxu0 %v929_v24  ;;  %1117 = vmatprep.subr.mxu1 %v949_v32 }
  0x26   : > { %1101 = vmatpush3.msra.mxu0 %v929_v24  ;;  %1118 = vmatpush3.msra.mxu1 %v949_v32  ;;  %v957_v32 = vld [vmem:[%s1546_s4 + $0x128] sm:$0xff] }
  0x27   : > { %1102 = vmatprep.subr.mxu0 %v928_v25  ;;  %1119 = vmatprep.subr.mxu1 %v948_v33 }
  0x28   : > { %1103 = vmatpush3.msra.mxu0 %v928_v25  ;;  %1120 = vmatpush3.msra.mxu1 %v948_v33  ;;  %v956_v33 = vld [vmem:[%s1546_s4 + $0x120] sm:$0xff] }
  0x29   : > { %1104 = vmatprep.subr.mxu0 %v927_v26  ;;  %1121 = vmatprep.subr.mxu1 %v947_v34 }
  0x2a   : > { %1105 = vmatpush3.msra.mxu0 %v927_v26  ;;  %1122 = vmatpush3.msra.mxu1 %v947_v34  ;;  %v955_v34 = vld [vmem:[%s1546_s4 + $0x118] sm:$0xff] }
  0x2b   : > { %1106 = vmatprep.subr.mxu0 %v926_v27  ;;  %1123 = vmatprep.subr.mxu1 %v946_v37 }
  0x2c   : > { %1107 = vmatpush3.msra.mxu0 %v926_v27  ;;  %1124 = vmatpush3.msra.mxu1 %v946_v37  ;;  %v962_v27 = vld [vmem:[%s1546_s4 + $0x150] sm:$0xff]  ;;  %v952_v37 = vld [vmem:[%s1546_s4 + $0x100] sm:$0xff] }
  0x2d   : > { %1108 = vmatprep.subr.mxu0 %v925_v28  ;;  %1125 = vmatprep.subr.mxu1 %v945_v39 }
  0x2e   : > { %1109 = vmatpush3.msra.mxu0 %v925_v28  ;;  %1126 = vmatpush3.msra.mxu1 %v945_v39  ;;  %v961_v28 = vld [vmem:[%s1546_s4 + $0x148] sm:$0xff] }
  0x2f   : > { %1111 = vmatmul.mubr.msk.f32.vlgmr.msra.gmra.mxu0 %vm274_vm0, %v438_v29  ;;  %1148 = vmatprep.subr.mxu0 %v569_v35  ;;  %v960_v29 = vld [vmem:[%s1546_s4 + $0x140] sm:$0xff] }
  0x30   : > { %1149 = vmatpush3.msra.mxu0 %v569_v35  ;;  %1127 = vmatprep.subr.mxu1 %v944_v41  ;;  %v954_v35 = vld [vmem:[%s1546_s4 + $0x110] sm:$0xff] }
  0x31   : > { %1150 = vmatprep.subr.mxu0 %v568_v36  ;;  %1128 = vmatpush3.msra.mxu1 %v944_v41 }
  0x32   : > { %1151 = vmatpush3.msra.mxu0 %v568_v36  ;;  %1129 = vmatprep.subr.mxu1 %v943_v43  ;;  %v953_v36 = vld [vmem:[%s1546_s4 + $0x108] sm:$0xff] }
  0x33   : > { %1152 = vmatprep.subr.mxu0 %v567_v38  ;;  %1130 = vmatpush3.msra.mxu1 %v943_v43 }
  0x34   : > { %1153 = vmatpush3.msra.mxu0 %v567_v38  ;;  %1131 = vmatprep.subr.mxu1 %v942_v45 }
  0x35   : > { %1154 = vmatprep.subr.mxu0 %v566_v40  ;;  %1132 = vmatpush3.msra.mxu1 %v942_v45  ;;  %v968_v45 = vld [vmem:[%s1547_s5] ss:$0 sm:$0xff] }
  0x36   : > { %1155 = vmatpush3.msra.mxu0 %v566_v40  ;;  %1133 = vmatprep.subr.mxu1 %v941_v47 }
  0x37   : > { %1156 = vmatprep.subr.mxu0 %v565_v42  ;;  %1134 = vmatpush3.msra.mxu1 %v941_v47 }
  0x38   : > { %1157 = vmatpush3.msra.mxu0 %v565_v42  ;;  %1135 = vmatprep.subr.mxu1 %v940_v48 }
  0x39   : > { %1158 = vmatprep.subr.mxu0 %v564_v44  ;;  %1136 = vmatpush3.msra.mxu1 %v940_v48 }
  0x3a   : > { %1159 = vmatpush3.msra.mxu0 %v564_v44  ;;  %1137 = vmatprep.subr.mxu1 %v939_v50 }
  0x3b   : > { %1160 = vmatprep.subr.mxu0 %v563_v46  ;;  %1138 = vmatpush3.msra.mxu1 %v939_v50 }
  0x3c   : > { %1161 = vmatpush3.msra.mxu0 %v563_v46  ;;  %1139 = vmatprep.subr.mxu1 %v938_v52 }
  0x3d   : > { %1162 = vmatprep.subr.mxu0 %v562_v49  ;;  %1140 = vmatpush3.msra.mxu1 %v938_v52 }
  0x3e   : > { %1163 = vmatpush3.msra.mxu0 %v562_v49  ;;  %1141 = vmatprep.subr.mxu1 %v937_v54 }
  0x3f   : > { %1164 = vmatprep.subr.mxu0 %v561_v51  ;;  %1142 = vmatpush3.msra.mxu1 %v937_v54 }
  0x40   : > { %1165 = vmatpush3.msra.mxu0 %v561_v51  ;;  %1143 = vmatprep.subr.mxu1 %v936_v56 }
  0x41   : > { %1166 = vmatprep.subr.mxu0 %v560_v53  ;;  %1144 = vmatpush3.msra.mxu1 %v936_v56 }
  0x42   : > { %1167 = vmatpush3.msra.mxu0 %v560_v53  ;;  %1183 = vmatprep.subr.mxu1 %v967_v59 }
  0x43   : > { %1168 = vmatprep.subr.mxu0 %v559_v55 }
  0x44   : > { %1169 = vmatpush3.msra.mxu0 %v559_v55 }
  0x45   : > { %1170 = vmatprep.subr.mxu0 %v558_v57 }
  0x46   : > { %1171 = vmatpush3.msra.mxu0 %v558_v57 }
  0x47   : > { %1172 = vmatprep.subr.mxu0 %v557_v60 }
  0x48   : > { %1173 = vmatpush3.msra.mxu0 %v557_v60 }
  0x49   : > { %1174 = vmatprep.subr.mxu0 %v556_v61 }
  0x4a   : > { %1175 = vmatpush3.msra.mxu0 %v556_v61 }
  0x4b   : > { %1176 = vmatprep.subr.mxu0 %v555_v62 }
  0x4c   : > { %1177 = vmatpush3.msra.mxu0 %v555_v62 }
  0x4d   : > { %1178 = vmatprep.subr.mxu0 %v554_v63 }
  0x4e   : > { %1179 = vmatpush3.msra.mxu0 %v554_v63 }
  0xde   : > { %v1074_v0 = vpop.f32.mrf.mxu0 }
  0xdf   : > { %v1093_v1 = vpop.f32.mrf.mxu1 }
  0xe0   : > { %v347_v2 = vpop.f32.mrf.mxu0  ;;  %v434_v4 = vadd.f32 %v1093_v1, %v1074_v0 }
  0xe1   : > { %v428_v3 = vpop.f32.mrf.mxu1 }
  0xe2   : > { %v429_v7 = vadd.f32 %v428_v3, %v347_v2 }
  0xef   : > { %v1112_v5 = vpop.f32.mrf.mxu0 }
  0xf0   : > { %v530_v8 = vadd.f32 %v1112_v5, %v434_v4 }
  0xf1   : > { %v520_v10 = vpop.f32.mrf.mxu0 }
  0xf2   : > { %v539_v11 = vadd.f32 %v935_v6, %v530_v8  ;;  %v529_v12 = vadd.f32 %v520_v10, %v429_v7 }
  0xf4   : > { %vm542_vm1 = vcmp.ge.f32.partialorder %v539_v11, 0.0  ;;  %v545_v13 = vmul.f32 %v543_v9, %v539_v11  ;;  %v538_v14 = vadd.f32 %v935_v6, %v529_v12 }
  0xf6   : > { %v547_v15 = vsel %vm542_vm1, %v539_v11, %v545_v13  ;;  %vm541_vm2 = vcmp.ge.f32.partialorder %v538_v14, 0.0  ;;  %v544_v17 = vmul.f32 %v543_v9, %v538_v14 }
  0xf7   : > { %551 = vst [vmem:[#allocation2 + $0x9] sm:$0xff] %v547_v15 }
  0xf8   : > { %v546_v19 = vsel %vm541_vm2, %v538_v14, %v544_v17 }
  0xf9   : > { %550 = vst [vmem:[#allocation2 + $0x1] sm:$0xff] %v546_v19  ;;  %1145 = vmatprep.mubr.f32.mxu1 %v546_v19 }
  0xfa   : > { %1146 = vmatmul.mubr.f32.vlgmr.msra.gmra.mxu1 %v547_v15 }
  0xfb   : > { %1184 = vmatpush3.msra.mxu1 %v967_v59 }
  0xfc   : > { %1185 = vmatprep.subr.mxu1 %v966_v20 }
  0xfd   : > { %1186 = vmatpush3.msra.mxu1 %v966_v20 }
  0xfe   : > { %1187 = vmatprep.subr.mxu1 %v965_v21  ;;  %v740_v38 = vld [vmem:[#allocation2 + $0xa] sm:$0xff] }
  0xff   : > { %1188 = vmatpush3.msra.mxu1 %v965_v21 }
 0x100   : > { %v552_v24 = vld [vmem:[#allocation2] sm:$0xff]  ;;  %v553_v25 = vld [vmem:[#allocation2 + $0x8] sm:$0xff]  ;;  %1189 = vmatprep.subr.mxu1 %v964_v22 }
 0x101   : > { %v739_v26 = vld [vmem:[#allocation2 + $0x2] sm:$0xff]  ;;  %1180 = vmatprep.mubr.f32.mxu0 %v552_v24  ;;  %1190 = vmatpush3.msra.mxu1 %v964_v22 }
 0x102   : > { %1215 = vmatprep.mubr.f32.mxu1 %v739_v26  ;;  %1181 = vmatmul.mubr.f32.vlgmr.msra.gmra.mxu0 %v553_v25 }
 0x103   : > { %1191 = vmatprep.subr.mxu1 %v963_v23 }
 0x104   : > { %1192 = vmatpush3.msra.mxu1 %v963_v23 }
 0x105   : > { %1193 = vmatprep.subr.mxu1 %v962_v27 }
 0x106   : > { %1194 = vmatpush3.msra.mxu1 %v962_v27 }
 0x107   : > { %1195 = vmatprep.subr.mxu1 %v961_v28 }
 0x108   : > { %1196 = vmatpush3.msra.mxu1 %v961_v28 }
 0x109   : > { %1197 = vmatprep.subr.mxu1 %v960_v29 }
 0x10a   : > { %1198 = vmatpush3.msra.mxu1 %v960_v29 }
 0x10b   : > { %1199 = vmatprep.subr.mxu1 %v959_v30 }
 0x10c   : > { %1200 = vmatpush3.msra.mxu1 %v959_v30 }
 0x10d   : > { %1201 = vmatprep.subr.mxu1 %v958_v31 }
 0x10e   : > { %1202 = vmatpush3.msra.mxu1 %v958_v31 }
 0x10f   : > { %1203 = vmatprep.subr.mxu1 %v957_v32 }
 0x110   : > { %1204 = vmatpush3.msra.mxu1 %v957_v32 }
 0x111   : > { %1205 = vmatprep.subr.mxu1 %v956_v33 }
 0x112   : > { %1206 = vmatpush3.msra.mxu1 %v956_v33 }
 0x113   : > { %1207 = vmatprep.subr.mxu1 %v955_v34 }
 0x114   : > { %1208 = vmatpush3.msra.mxu1 %v955_v34 }
 0x115   : > { %1209 = vmatprep.subr.mxu1 %v954_v35 }
 0x116   : > { %1210 = vmatpush3.msra.mxu1 %v954_v35 }
 0x117   : > { %1211 = vmatprep.subr.mxu1 %v953_v36 }
 0x118   : > { %1212 = vmatpush3.msra.mxu1 %v953_v36 }
 0x119   : > { %1213 = vmatprep.subr.mxu1 %v952_v37 }
 0x11a   : > { %1214 = vmatpush3.msra.mxu1 %v952_v37 }
 0x11b   : > { %1216 = vmatmul.mubr.f32.vlgmr.msra.gmra.mxu1 %v740_v38 }
 0x1ba   : > { %v1147_v39 = vpop.f32.mrf.mxu1 }
 0x1bc   : > { %v655_v41 = vpop.f32.mrf.mxu1 }
 0x1c2   : > { %v1182_v40 = vpop.f32.mrf.mxu0 }
 0x1c3   : > { %v736_v43 = vadd.f32 %v1182_v40, %v1147_v39 }
 0x1c4   : > { %v730_v42 = vpop.f32.mrf.mxu0 }
 0x1c5   : > { %v731_v46 = vadd.f32 %v730_v42, %v655_v41 }
 0x1db   : > { %v1217_v44 = vpop.f32.mrf.mxu1 }
 0x1dc   : > { %v834_v47 = vadd.f32 %v1217_v44, %v736_v43 }
 0x1dd   : > { %v824_v48 = vpop.f32.mrf.mxu1 }
 0x1de   : > { %v843_v49 = vadd.f32 %v968_v45, %v834_v47  ;;  %v833_v50 = vadd.f32 %v824_v48, %v731_v46 }
 0x1e0   : > { %v847_v51 = vadd.f32 %v843_v49, %v1344_v18  ;;  %v842_v52 = vadd.f32 %v968_v45, %v833_v50 }
 0x1e2   : > { %849 = vst.msk [vmem:[%s252_s18 + $0x8] sm:$0xff] %vm274_vm0, %v847_v51  ;;  %v846_v53 = vadd.f32 %v842_v52, %v1340_v16 }
 0x1e4   : > { %848 = vst.msk [vmem:[%s252_s18] sm:$0xff] %vm274_vm0, %v846_v53 }
 0x1e5 PF: > { %s17_s23 = sadd.s32 1, %s1234_s23  }
 0x1e6   : > { %p14_p4 = scmp.ge.s32.totalorder %s17_s23, 4  }
 0x1e8   :  { %16 = sbr.rel (!%p14_p4) target bundleno = 2 (0x2), region = 78 }

</bundles_post_ra>
